<compile_context>
chip_gen: v7x
topology: tpu7x:2x2x1
jax: 0.10.0
libtpu: 0.0.40
codegen_flags: <defaults>
</compile_context>

<pallas_src>
import functools

import jax
import jax.numpy as jnp
from jax.experimental import pallas as pl
from jax.experimental.pallas import tpu as pltpu

N = 64         # batched rows (all LatentCode invocations stacked into one call)
DIM_FEAT = 256 # input feature dim (DeepContent feature)
DIM = 128      # latent code dim (param.dim)


def _round_up(x, m):
    return ((x + m - 1) // m) * m


def _default_num_row_blocks():
    """2 row blocks on dual-TensorCore v7x, 1 on single-TC v5e/v6e."""
    try:
        kind = jax.devices()[0].device_kind.lower()
    except Exception:
        return 1
    return 2 if "v7" in kind else 1


def _latent_code_kernel(*refs, without_binary, scale_tanh, binary01, has_scale):
    if has_scale:
        scale_ref, x_ref, w_ref, b_ref, o_ref = refs
    else:
        scale_ref = None
        x_ref, w_ref, b_ref, o_ref = refs

    # feat(): fused Linear on the MXU.  x is cast to the (bf16) weight dtype
    # in-kernel; accumulation stays f32.
    xb = x_ref[...].astype(w_ref.dtype)
    y = jnp.dot(xb, w_ref[...], preferred_element_type=jnp.float32)
    y = y + b_ref[...]  # (tm, dim) + (1, dim) broadcast, b already f32

    if without_binary:
        # Early return BEFORE scale_tanh, matching LatentCode.forward ordering.
        o_ref[...] = y.astype(o_ref.dtype)
        return

    if scale_tanh:
        y = y * scale_ref[0]  # scalar `scale` buffer, read from SMEM

    t = jnp.tanh(y)
    if binary01:
        o_ref[...] = (0.5 * (t + 1.0)).astype(o_ref.dtype)
    else:
        # torch .view(-1, dim): output is already (tm, dim); a no-op here.
        o_ref[...] = t.astype(o_ref.dtype)


def latent_code_forward(x, w, b, scale=None, *,
                        without_binary=False, scale_tanh=True, binary01=False,
                        num_row_blocks=None, use_bf16=True):
    """x: (N, dim_feat) f32, w: (dim_feat, dim) [pre-transposed], b: (1, dim), scale: (1,)."""
    n, dim_feat = x.shape
    dim = w.shape[1]

    if num_row_blocks is None:
        num_row_blocks = _default_num_row_blocks()

    # Row tile: whole batch in one grid step on single-TC chips; split into
    # (up to) num_row_blocks 8-aligned blocks on v7x.  Ragged last block is
    # handled by Pallas (masked store), so no host-side pad / slice.
    if num_row_blocks <= 1:
        tm = n
    else:
        tm = _round_up(pl.cdiv(n, num_row_blocks), 8)
        if tm >= n:
            tm = n
    grid = (pl.cdiv(n, tm),)

    # W cast once on the host (constant-folded); b kept f32.
    w_op = w.astype(jnp.bfloat16) if use_bf16 else w
    b_f32 = b.astype(jnp.float32)

    has_scale = bool(scale_tanh) and not without_binary
    # Bounded outputs ([-1,1] / [0,1]) in bf16; raw projection stays f32.
    out_dtype = jnp.float32 if without_binary else jnp.bfloat16

    kernel = functools.partial(
        _latent_code_kernel,
        without_binary=without_binary, scale_tanh=scale_tanh,
        binary01=binary01, has_scale=has_scale)

    in_specs = []
    args = []
    if has_scale:
        in_specs.append(pl.BlockSpec(memory_space=pltpu.SMEM))   # scale scalar
        args.append(scale.astype(jnp.float32))
    in_specs += [
        pl.BlockSpec((tm, dim_feat), lambda i: (i, 0)),          # x: row-tiled, f32
        pl.BlockSpec((dim_feat, dim), lambda i: (0, 0)),         # W: VMEM-resident
        pl.BlockSpec((1, dim), lambda i: (0, 0)),                # b: VMEM-resident
    ]
    args += [x, w_op, b_f32]

    cost = pl.CostEstimate(
        flops=2 * n * dim_feat * dim,
        transcendentals=0 if without_binary else n * dim,
        bytes_accessed=(n * dim_feat * jnp.dtype(x.dtype).itemsize   # x (read once)
                        + dim_feat * dim * jnp.dtype(w_op.dtype).itemsize  # W (resident)
                        + dim * 4                                     # b
                        + n * dim * jnp.dtype(out_dtype).itemsize),   # out
    )

    return pl.pallas_call(
        kernel,
        out_shape=jax.ShapeDtypeStruct((n, dim), out_dtype),
        grid=grid,
        in_specs=in_specs,
        out_specs=pl.BlockSpec((tm, dim), lambda i: (i, 0)),
        compiler_params=pltpu.CompilerParams(
            dimension_semantics=("parallel",)),                  # shards across 2 TCs on v7x
        cost_estimate=cost,
    )(*args)


if __name__ == "__main__":
    key = jax.random.PRNGKey(0)
    kx, kw, kb = jax.random.split(key, 3)

    # Deterministic synthetic parameters (shapes implied by the module's forward).
    x = jax.random.normal(kx, (N, DIM_FEAT), dtype=jnp.float32)
    # PyTorch Linear weight is (dim, dim_feat); stored pre-transposed for the kernel.
    w = jax.random.normal(kw, (DIM_FEAT, DIM), dtype=jnp.float32) * 0.05
    b = jax.random.normal(kb, (1, DIM), dtype=jnp.float32) * 0.01
    scale = jnp.ones((1,), dtype=jnp.float32)  # register_buffer('scale', torch.ones(1))

    # Reference uses the same bf16 MXU operands the kernel sees (f32 accumulation).
    xb = x.astype(jnp.bfloat16).astype(jnp.float32)
    wb = w.astype(jnp.bfloat16).astype(jnp.float32)
    y_ref = xb @ wb + b

    # Default branch: tanh(scale * feat(x)).view(-1, dim); bf16 output.
    out = latent_code_forward(x, w, b, scale)
    jax.block_until_ready(out)
    ref = jnp.tanh(y_ref * scale[0]).reshape(-1, DIM)
    assert out.shape == (N, DIM)
    assert jnp.allclose(out.astype(jnp.float32), ref, atol=2e-2, rtol=2e-2)

    # without_binary branch: early return of feat(x) (NO scale applied); f32 output.
    out_wb = latent_code_forward(x, w, b, scale, without_binary=True)
    jax.block_until_ready(out_wb)
    assert out_wb.dtype == jnp.float32
    assert jnp.allclose(out_wb, y_ref, atol=1e-2, rtol=1e-3)

    # binary01 branch: 0.5*(tanh(scale*feat(x))+1); bf16 output.
    out_b01 = latent_code_forward(x, w, b, scale, binary01=True)
    jax.block_until_ready(out_b01)
    ref_b01 = 0.5 * (jnp.tanh(y_ref * scale[0]) + 1.0)
    assert jnp.allclose(out_b01.astype(jnp.float32), ref_b01, atol=2e-2, rtol=2e-2)

    print("KERNEL_OK")
</pallas_src>

<mosaic_0001>
module attributes {stable_mosaic.version = 11 : i64} {
  func.func @_latent_code_kernel(%arg0: i32, %arg1: memref<1xf32, #tpu.memory_space<smem>>, %arg2: memref<64x256xf32, #tpu.memory_space<vmem>>, %arg3: memref<256x128xbf16, #tpu.memory_space<vmem>>, %arg4: memref<1x128xf32, #tpu.memory_space<vmem>>, %arg5: memref<64x128xbf16, #tpu.memory_space<vmem>>) attributes {dimension_semantics = [#tpu.dimension_semantics<parallel>], iteration_bounds = array<i64: 1>, scalar_prefetch = 0 : i64, scratch_operands = 0 : i64, tpu.core_type = #tpu.core_type<tc>, window_params = [{transform_indices = @transform_0, window_bounds = array<i64: 1>}, {transform_indices = @transform_1, window_bounds = array<i64: 64, 256>}, {pipeline_mode = #tpu.pipeline_mode<synchronous>, transform_indices = @transform_2, window_bounds = array<i64: 256, 128>}, {pipeline_mode = #tpu.pipeline_mode<synchronous>, transform_indices = @transform_3, window_bounds = array<i64: 1, 128>}, {transform_indices = @transform_4, window_bounds = array<i64: 64, 128>}]} {
    %c0 = arith.constant 0 : index
    %c0_0 = arith.constant 0 : index
    %0 = vector.load %arg2[%c0, %c0_0] : memref<64x256xf32, #tpu.memory_space<vmem>>, vector<64x256xf32>
    %1 = arith.truncf %0 : vector<64x256xf32> to vector<64x256xbf16>
    %c0_1 = arith.constant 0 : index
    %c0_2 = arith.constant 0 : index
    %2 = vector.load %arg3[%c0_1, %c0_2] : memref<256x128xbf16, #tpu.memory_space<vmem>>, vector<256x128xbf16>
    %cst = arith.constant dense<0.000000e+00> : vector<64x128xf32>
    %3 = tpu.matmul %1, %2, %cst {dimension_numbers = #tpu.dot_dimension_numbers<[1], [0], [0], [1], [0, 0, 1, 1], [], []>} : vector<64x256xbf16>, vector<256x128xbf16>, vector<64x128xf32> -> vector<64x128xf32>
    %c0_3 = arith.constant 0 : index
    %c0_4 = arith.constant 0 : index
    %4 = vector.load %arg4[%c0_3, %c0_4] : memref<1x128xf32, #tpu.memory_space<vmem>>, vector<1x128xf32>
    %5 = vector.broadcast %4 : vector<1x128xf32> to vector<64x128xf32>
    %6 = arith.addf %3, %5 : vector<64x128xf32>
    %c0_5 = arith.constant 0 : index
    %7 = memref.load %arg1[%c0_5] : memref<1xf32, #tpu.memory_space<smem>>
    %8 = vector.broadcast %7 : f32 to vector<64x128xf32>
    %9 = arith.mulf %6, %8 : vector<64x128xf32>
    %10 = math.tanh %9 : vector<64x128xf32>
    %11 = arith.truncf %10 : vector<64x128xf32> to vector<64x128xbf16>
    %c0_6 = arith.constant 0 : index
    %c0_7 = arith.constant 0 : index
    %12 = vector.load %arg5[%c0_6, %c0_7] : memref<64x128xbf16, #tpu.memory_space<vmem>>, vector<64x128xbf16>
    tpu.vector_store %arg5[%c0_6, %c0_7], %11 {strides = array<i32>} : memref<64x128xbf16, #tpu.memory_space<vmem>>, vector<64x128xbf16>,
    return
  }
  func.func @transform_0(%arg0: i32) -> i32 {
    %c0_i32 = arith.constant 0 : i32
    %c0_i32_0 = arith.constant 0 : i32
    return %c0_i32 : i32
  }
  func.func @transform_1(%arg0: i32) -> (i32, i32) {
    %c0_i32 = arith.constant 0 : i32
    %c0_i32_0 = arith.constant 0 : i32
    return %arg0, %c0_i32 : i32, i32
  }
  func.func @transform_2(%arg0: i32) -> (i32, i32) {
    %c0_i32 = arith.constant 0 : i32
    %c0_i32_0 = arith.constant 0 : i32
    %c0_i32_1 = arith.constant 0 : i32
    return %c0_i32, %c0_i32_0 : i32, i32
  }
  func.func @transform_3(%arg0: i32) -> (i32, i32) {
    %c0_i32 = arith.constant 0 : i32
    %c0_i32_0 = arith.constant 0 : i32
    %c0_i32_1 = arith.constant 0 : i32
    return %c0_i32, %c0_i32_0 : i32, i32
  }
  func.func @transform_4(%arg0: i32) -> (i32, i32) {
    %c0_i32 = arith.constant 0 : i32
    %c0_i32_0 = arith.constant 0 : i32
    return %arg0, %c0_i32 : i32, i32
  }
}

</mosaic_0001>

<bundles_post_ra>
// kernel: tpu_custom_call.1
= control target key start
LH: loop header
LB: loop body
LE: loop exit
PB: predicated region body
PF: predicated region fallthrough
CT: control target
= control target key end

     0   :  { %10 = vsyncpa [#allocation4], 0  ;;  %s651_s0 = inlined_call_operand.<no memory space> [shape: f32[1], index: 0, kind: input, shape index: {}]   ;;  %s652_s1 = inlined_call_operand.hbm [shape: f32[64,256], index: 1, kind: input, shape index: {}]   ;;  %s653_s2 = inlined_call_operand.hbm [shape: bf16[256,128], index: 2, kind: input, shape index: {}]   ;;  %s654_s3 = inlined_call_operand.vmem [shape: f32[1,128], index: 3, kind: input, shape index: {}]   ;;  %s655_s4 = inlined_call_operand.hbm [shape: bf16[64,128], index: 4, kind: output, shape index: {}]  }
   0x1   :  { %11 = vsyncpa [#allocation7], 0 }
   0x2   :  { %12 = vsyncpa [#allocation5], 0  ;;  %s571_s15 = smov [#allocation3]   ;;  %s499_s19 = scalar_lea.hbm %s652_s1, 2048 }
   0x3   :  { %s20_s16 = sshll.u32 %s571_s15, 4  ;;  %p500_p0 = scmp.ne.s32.totalorder %s652_s1, %s499_s19  ;;  %s21_s16 = int_to_ptr.vmem [resolvable:$true] %s20_s16 }
   0x4   :  { %p503_p1 = scmp.lt.u32.totalorder %s499_s19, %s652_s1 }
   0x6   :  { %p505_p2 = pnand %p503_p1, %p500_p0 }
   0x8   :  { %508 = shalt.err (!%p505_p2)
}
   0x9   :  { %s509_s24 = scalar_lea.vmem %s21_s16, 2048  ;;  %p514_p4 = scmp.lt.s32.totalorder %s21_s16, %s21_s16 }
   0xa   :  { %p510_p3 = scmp.ne.s32.totalorder %s21_s16, %s509_s24  ;;  %p515_p5 = scmp.lt.s32.totalorder %s509_s24, %s509_s24 }
   0xc   :  { %p516_p6 = por %p515_p5, %p514_p4 }
   0xe   :  { %p517_p7 = pnand %p516_p6, %p510_p3 }
  0x10   :  { %520 = shalt.err (!%p517_p7)
}
  0x11   :  { %s572_s25 = smov 256   ;;  %s573_s26 = smov 16  }
  0x12   :  { %26 = dma.hbm_to_vmem [thread:$0]  %s652_s1, 2048, %s21_s16, [#allocation4], %s572_s25, %s572_s25, %s573_s26  }
  0x13   :  { %s574_s29 = smov [#allocation6]   ;;  %s521_s7 = scalar_lea.hbm %s653_s2, 2048 }
  0x14   :  { %s32_s30 = sshll.u32 %s574_s29, 4  ;;  %p522_p8 = scmp.ne.s32.totalorder %s653_s2, %s521_s7  ;;  %s33_s30 = int_to_ptr.vmem [resolvable:$true] %s32_s30 }
  0x15   :  { %p525_p9 = scmp.lt.u32.totalorder %s521_s7, %s653_s2 }
  0x17   :  { %p527_p10 = pnand %p525_p9, %p522_p8 }
  0x19   :  { %530 = shalt.err (!%p527_p10)
}
  0x1a   :  { %s531_s12 = scalar_lea.vmem %s33_s30, 2048  ;;  %p536_p12 = scmp.lt.s32.totalorder %s33_s30, %s33_s30 }
  0x1b   :  { %p532_p11 = scmp.ne.s32.totalorder %s33_s30, %s531_s12  ;;  %p537_p13 = scmp.lt.s32.totalorder %s531_s12, %s531_s12 }
  0x1d   :  { %p538_p0 = por %p537_p13, %p536_p12 }
  0x1f   :  { %p539_p1 = pnand %p538_p0, %p532_p11 }
  0x21   :  { %542 = shalt.err (!%p539_p1)
}
  0x22   :  { %s575_s1 = smov 64   ;;  %s576_s13 = smov 4  }
  0x23   :  { %38 = dma.hbm_to_vmem [thread:$0]  %s653_s2, 2048, %s33_s30, [#allocation7], %s575_s1, %s575_s1, %s576_s13  }
  0x24   :  { %565 = dma.done.wait [#allocation4], 2048  }
  0x25   :  { %566 = vsyncadd [#allocation4], 4294965248 }
  0x26   :  { %567 = dma.done.wait [#allocation7], 2048  }
  0x27   :  { %568 = vsyncadd [#allocation7], 4294965248  ;;  %v467_v0 = vld [vmem:[#allocation6 + $0x40] sm:$0xff]   ;;  %v469_v2 = vld [vmem:[#allocation6 + $0x48] sm:$0xff]   ;;  %v273_v49 = vstv %s651_s0  ;;  %s577_s0 = smov [#allocation8]  }
  0x28   :  { %v468_v1 = vld [vmem:[#allocation6] sm:$0xff]   ;;  %404 = vmatprep.subr.bf16.mxu0 %v467_v0  ;;  %444 = vmatprep.subr.bf16.mxu1 %v467_v0  ;;  %v470_v3 = vld [vmem:[#allocation6 + $0x8] sm:$0xff]   ;;  %v471_v4 = vld [vmem:[#allocation6 + $0x50] sm:$0xff]  }
  0x29   :  { %405 = vmatpush3.bf16.msra.mxu0 %v468_v1  ;;  %452 = vmatpush3.bf16.msra.mxu1 %v468_v1  ;;  %v472_v5 = vld [vmem:[#allocation6 + $0x10] sm:$0xff]   ;;  %v473_v6 = vld [vmem:[#allocation6 + $0x58] sm:$0xff]   ;;  %v475_v8 = vld [vmem:[#allocation6 + $0x60] sm:$0xff]  }
  0x2a   :  { %406 = vmatprep.subr.bf16.mxu0 %v469_v2  ;;  %445 = vmatprep.subr.bf16.mxu1 %v469_v2  ;;  %v474_v7 = vld [vmem:[#allocation6 + $0x18] sm:$0xff]   ;;  %v476_v9 = vld [vmem:[#allocation6 + $0x20] sm:$0xff]   ;;  %v477_v10 = vld [vmem:[#allocation6 + $0x68] sm:$0xff]  }
  0x2b   :  { %v49_v11 = vld [vmem:[#allocation3 + $0x8] sm:$0xff]  ;;  %v51_v12 = vld [vmem:[#allocation3 + $0x18] sm:$0xff]  ;;  %v479_v18 = vld [vmem:[#allocation6 + $0x70] sm:$0xff]  }
  0x2c   :  { %v57_v13 = vld [vmem:[#allocation3 + $0x48] sm:$0xff]  ;;  %v65_v14 = vpack.c.bf16 %v51_v12, %v49_v11  ;;  %v59_v15 = vld [vmem:[#allocation3 + $0x58] sm:$0xff]  ;;  %v480_v19 = vld [vmem:[#allocation6 + $0x30] sm:$0xff]  }
  0x2d   :  { %407 = vmatpush3.bf16.msra.mxu0 %v470_v3  ;;  %453 = vmatpush3.bf16.msra.mxu1 %v470_v3  ;;  %v69_v16 = vpack.c.bf16 %v59_v15, %v57_v13  ;;  %v478_v17 = vld [vmem:[#allocation6 + $0x28] sm:$0xff]   ;;  %v481_v20 = vld [vmem:[#allocation6 + $0x78] sm:$0xff]   ;;  %v48_v22 = vld [vmem:[#allocation3] sm:$0xff] }
  0x2e   :  { %408 = vmatprep.subr.bf16.mxu0 %v471_v4  ;;  %446 = vmatprep.subr.bf16.mxu1 %v471_v4  ;;  %v482_v21 = vld [vmem:[#allocation6 + $0x38] sm:$0xff]   ;;  %v50_v23 = vld [vmem:[#allocation3 + $0x10] sm:$0xff]  ;;  %v56_v24 = vld [vmem:[#allocation3 + $0x40] sm:$0xff] }
  0x2f   :  { %239 = vmatprep.mubr.bf16.mxu0 %v65_v14  ;;  %255 = vmatprep.mubr.bf16.mxu1 %v69_v16  ;;  %v58_v25 = vld [vmem:[#allocation3 + $0x50] sm:$0xff]  ;;  %v53_v26 = vld [vmem:[#allocation3 + $0x28] sm:$0xff]  ;;  %v55_v27 = vld [vmem:[#allocation3 + $0x38] sm:$0xff]  ;;  %v64_v30 = vpack.c.bf16 %v50_v23, %v48_v22 }
  0x30   :  { %v61_v28 = vld [vmem:[#allocation3 + $0x68] sm:$0xff]  ;;  %v63_v29 = vld [vmem:[#allocation3 + $0x78] sm:$0xff]  ;;  %v68_v31 = vpack.c.bf16 %v58_v25, %v56_v24  ;;  %v67_v32 = vpack.c.bf16 %v55_v27, %v53_v26  ;;  %v52_v34 = vld [vmem:[#allocation3 + $0x20] sm:$0xff] }
  0x31   :  { %409 = vmatpush3.bf16.msra.mxu0 %v472_v5  ;;  %454 = vmatpush3.bf16.msra.mxu1 %v472_v5  ;;  %v71_v33 = vpack.c.bf16 %v63_v29, %v61_v28  ;;  %v54_v35 = vld [vmem:[#allocation3 + $0x30] sm:$0xff]  ;;  %v60_v36 = vld [vmem:[#allocation3 + $0x60] sm:$0xff] }
  0x32   :  { %410 = vmatprep.subr.bf16.mxu0 %v473_v6  ;;  %447 = vmatprep.subr.bf16.mxu1 %v473_v6  ;;  %v62_v37 = vld [vmem:[#allocation3 + $0x70] sm:$0xff]  ;;  %v66_v38 = vpack.c.bf16 %v54_v35, %v52_v34  ;;  %v348_v42 = vld [vmem:[%s654_s3] ss:$0 sm:$0xff]  ;;  %s335_s3 = sshll.u32 %s577_s0, 4  ;;  %s336_s3 = int_to_ptr.vmem [resolvable:$true] %s335_s3 }
  0x33   :  { %v70_v39 = vpack.c.bf16 %v62_v37, %v60_v36  ;;  %s543_s19 = scalar_lea.vmem %s336_s3, 512  ;;  %p548_p3 = scmp.lt.s32.totalorder %s336_s3, %s336_s3 }
  0x34   :  { %p544_p2 = scmp.ne.s32.totalorder %s336_s3, %s543_s19  ;;  %p549_p4 = scmp.lt.s32.totalorder %s543_s19, %s543_s19 }
  0x35   :  { %411 = vmatpush3.bf16.msra.mxu0 %v474_v7  ;;  %455 = vmatpush3.bf16.msra.mxu1 %v474_v7 }
  0x36   :  { %412 = vmatprep.subr.bf16.mxu0 %v475_v8  ;;  %448 = vmatprep.subr.bf16.mxu1 %v475_v8  ;;  %p550_p5 = por %p549_p4, %p548_p3 }
  0x38   :  { %p551_p6 = pnand %p550_p5, %p544_p2 }
  0x39   :  { %413 = vmatpush3.bf16.msra.mxu0 %v476_v9  ;;  %456 = vmatpush3.bf16.msra.mxu1 %v476_v9 }
  0x3a   :  { %414 = vmatprep.subr.bf16.mxu0 %v477_v10  ;;  %449 = vmatprep.subr.bf16.mxu1 %v477_v10 }
  0x3d   :  { %415 = vmatpush3.bf16.msra.mxu0 %v478_v17  ;;  %457 = vmatpush3.bf16.msra.mxu1 %v478_v17 }
  0x3e   :  { %416 = vmatprep.subr.bf16.mxu0 %v479_v18  ;;  %450 = vmatprep.subr.bf16.mxu1 %v479_v18 }
  0x41   :  { %417 = vmatpush3.bf16.msra.mxu0 %v480_v19  ;;  %458 = vmatpush3.bf16.msra.mxu1 %v480_v19 }
  0x42   :  { %418 = vmatprep.subr.bf16.mxu0 %v481_v20  ;;  %451 = vmatprep.subr.bf16.mxu1 %v481_v20 }
  0x45   :  { %419 = vmatpush3.bf16.msra.mxu0 %v482_v21  ;;  %459 = vmatpush3.bf16.msra.mxu1 %v482_v21 }
  0x48   :  { %240 = vmatmul.mubr.bf16.vlgmr.msra.gmra.mrb[0].mxu0 %v64_v30  ;;  %256 = vmatmul.mubr.bf16.vlgmr.msra.gmra.mrb[0].mxu1 %v68_v31 }
  0x49   :  { %247 = vmatprep.mubr.bf16.mxu0 %v67_v32  ;;  %263 = vmatprep.mubr.bf16.mxu1 %v71_v33 }
  0x50   :  { %248 = vmatmul.mubr.bf16.gmra.mrb[4].mxu0 %v66_v38  ;;  %264 = vmatmul.mubr.bf16.gmra.mrb[4].mxu1 %v70_v39 }
 0x11b   :  { %v420_v40 = vpop.f32.mrb[0].mxu0  ;;  %v432_v41 = vpop.f32.mrb[0].mxu1 }
 0x11c   :  { %v421_v43 = vpop.f32.mrb[1].mxu0  ;;  %v433_v44 = vpop.f32.mrb[1].mxu1 }
 0x11d   :  { %v422_v45 = vadd.f32 %v421_v43, %v420_v40  ;;  %v434_v46 = vadd.f32 %v433_v44, %v432_v41  ;;  %v423_v47 = vpop.f32.mrb[2].mxu0  ;;  %v435_v48 = vpop.f32.mrb[2].mxu1 }
 0x11e   :  { %v424_v50 = vpop.f32.mrb[3].mxu0  ;;  %v436_v51 = vpop.f32.mrb[3].mxu1 }
 0x11f   :  { %v242_v52 = vadd.f32 %v422_v45, %v348_v42  ;;  %v258_v53 = vadd.f32 %v434_v46, %v348_v42  ;;  %v425_v54 = vadd.f32 %v424_v50, %v423_v47  ;;  %v437_v55 = vadd.f32 %v436_v51, %v435_v48 }
 0x121   :  { %v274_v56 = vmul.f32 %v273_v49, %v242_v52  ;;  %v278_v57 = vmul.f32 %v273_v49, %v258_v53  ;;  %v245_v58 = vadd.f32 %v425_v54, %v348_v42  ;;  %v261_v59 = vadd.f32 %v437_v55, %v348_v42 }
 0x123   :  { %483 = vtanh.f32 %v274_v56  ;;  %v275_v60 = vmul.f32 %v273_v49, %v245_v58  ;;  %v279_v61 = vmul.f32 %v273_v49, %v261_v59  ;;  %v426_v62 = vpop.f32.mrb[4].mxu0  ;;  %v438_v63 = vpop.f32.mrb[4].mxu1 }
 0x124   :  { %485 = vtanh.f32 %v278_v57  ;;  %v427_v0 = vpop.f32.mrb[5].mxu0  ;;  %v439_v1 = vpop.f32.mrb[5].mxu1 }
 0x125   :  { %487 = vtanh.f32 %v275_v60  ;;  %v428_v2 = vadd.f32 %v427_v0, %v426_v62  ;;  %v440_v3 = vadd.f32 %v439_v1, %v438_v63  ;;  %v429_v4 = vpop.f32.mrb[6].mxu0  ;;  %v441_v5 = vpop.f32.mrb[6].mxu1 }
 0x126   :  { %489 = vtanh.f32 %v279_v61  ;;  %v430_v6 = vpop.f32.mrb[7].mxu0  ;;  %v442_v7 = vpop.f32.mrb[7].mxu1 }
 0x127   :  { %v250_v8 = vadd.f32 %v428_v2, %v348_v42  ;;  %v266_v9 = vadd.f32 %v440_v3, %v348_v42  ;;  %v431_v10 = vadd.f32 %v430_v6, %v429_v4  ;;  %v443_v11 = vadd.f32 %v442_v7, %v441_v5 }
 0x129   :  { %v276_v12 = vmul.f32 %v273_v49, %v250_v8  ;;  %v280_v13 = vmul.f32 %v273_v49, %v266_v9  ;;  %v253_v14 = vadd.f32 %v431_v10, %v348_v42  ;;  %v269_v15 = vadd.f32 %v443_v11, %v348_v42 }
 0x12b   :  { %491 = vtanh.f32 %v276_v12  ;;  %v277_v16 = vmul.f32 %v273_v49, %v253_v14  ;;  %v281_v17 = vmul.f32 %v273_v49, %v269_v15 }
 0x12c   :  { %493 = vtanh.f32 %v280_v13 }
 0x12d   :  { %v484_v18 = vpop.eup %483  ;;  %495 = vtanh.f32 %v277_v16 }
 0x12e   :  { %v486_v19 = vpop.eup %485  ;;  %497 = vtanh.f32 %v281_v17 }
 0x12f   :  { %v488_v20 = vpop.eup %487 }
 0x130   :  { %v490_v21 = vpop.eup %489  ;;  %v384_v22 = vpack.c.bf16 %v488_v20, %v484_v18 }
 0x131   :  { %v394_v23 = vpack.c.bf16 %v490_v21, %v486_v19 }
 0x132   :  { %385 = vst [vmem:[#allocation8] sm:$0xff] %v384_v22  }
 0x133   :  { %402 = vst [vmem:[#allocation8 + $0x10] sm:$0xff] %v394_v23  }
 0x135   :  { %v492_v24 = vpop.eup %491 }
 0x136   :  { %v494_v25 = vpop.eup %493 }
 0x137   :  { %v496_v26 = vpop.eup %495 }
 0x138   :  { %v498_v27 = vpop.eup %497  ;;  %v389_v28 = vpack.c.bf16 %v496_v26, %v492_v24 }
 0x139   :  { %v399_v29 = vpack.c.bf16 %v498_v27, %v494_v25 }
 0x13a   :  { %401 = vst [vmem:[#allocation8 + $0x8] sm:$0xff] %v389_v28  }
 0x13b   :  { %403 = vst [vmem:[#allocation8 + $0x18] sm:$0xff] %v399_v29  }
 0x13c   :  { %554 = shalt.err (!%p551_p6)
}
 0x13d   :  { %s555_s22 = scalar_lea.hbm %s655_s4, 512 }
 0x13e   :  { %p556_p7 = scmp.ne.s32.totalorder %s655_s4, %s555_s22  ;;  %p559_p8 = scmp.lt.u32.totalorder %s555_s22, %s655_s4 }
 0x140   :  { %p561_p9 = pnand %p559_p8, %p556_p7 }
 0x142   :  { %564 = shalt.err (!%p561_p9)
}
 0x143   :  { %341 = dma.vmem_to_hbm [thread:$0]  %s336_s3, 512, %s655_s4, [#allocation5], %s575_s1, %s575_s1, %s576_s13  }
 0x144   :  { %569 = dma.done.wait [#allocation5], 512  }
 0x145   :  { %570 = vsyncadd [#allocation5], 4294966784 }
 0x146   :  { %345 = vsyncpa [#allocation4], 1 }
 0x147   :  { %346 = vsyncpa [#allocation7], 1 }
 0x148   :  { %347 = vsyncpa [#allocation5], 1 }

</bundles_post_ra>
